<compile_context>
chip_gen: v7x
topology: tpu7x:2x2x1
jax: 0.10.0
libtpu: 0.0.40
codegen_flags: <defaults>
</compile_context>

<pallas_src>
import functools

import jax
import jax.numpy as jnp
from jax.experimental import pallas as pl
from jax.experimental.pallas import tpu as pltpu


def _round_up(x, m):
    return ((x + m - 1) // m) * m


def _bpr_kernel(ue_ref, pe_ref, ne_ref,      # (TB, D) gathered tiles
                out_ref,                     # (1, 2): [logsig sum, L2 sum]
                *, batch):
    t = pl.program_id(0)
    tb = ue_ref.shape[0]

    # Cast once per tile; accumulate in f32 (v5e VPU has no bf16).
    ue = ue_ref[...].astype(jnp.float32)     # (TB, D)
    pe = pe_ref[...].astype(jnp.float32)
    ne = ne_ref[...].astype(jnp.float32)

    # Rows past `batch` (partial last tile) hold undefined data — mask them
    # out of both reductions.
    row = jax.lax.broadcasted_iota(jnp.int32, (tb, 1), 0) + t * tb
    valid = row < batch                      # (TB, 1) bool

    # diff_r = <u_r, p_r - n_r>; exact f32 cross-lane reduce (XLU slot —
    # MXU stays idle, the kernel is HBM-bound anyway).
    diff = jnp.sum(ue * (pe - ne), axis=1, keepdims=True)        # (TB, 1)

    # Numerically stable log(sigmoid(x)) = -softplus(-x).
    logsig = jnp.where(diff > 0,
                       -jnp.log1p(jnp.exp(-diff)),
                       diff - jnp.log1p(jnp.exp(diff)))          # (TB, 1)
    logsig = jnp.where(valid, logsig, jnp.float32(0.0))

    sq = ue * ue + pe * pe + ne * ne                             # (TB, D)
    l2_rows = jnp.where(valid,
                        jnp.sum(sq, axis=1, keepdims=True),
                        jnp.float32(0.0))                        # (TB, 1)

    # Single per-tile output block; grid axis is fully independent.
    out_ref[...] = jnp.concatenate(
        [jnp.sum(logsig, axis=0, keepdims=True),
         jnp.sum(l2_rows, axis=0, keepdims=True)], axis=1)       # (1, 2)


def bpr_forward(u_g_embeddings, i_g_embeddings, u, i, j, reg,
                block_rows=2048, vmem_budget_bytes=12 * 1024 * 1024):
    """Pallas BPR forward. u/i/j are int32 index vectors of shape (B,)."""
    # Pre-gather in the wrapper: three contiguous (B, D) slabs for the kernel.
    ue = u_g_embeddings[u]
    pe = i_g_embeddings[i]
    ne = i_g_embeddings[j]

    batch, emb_dim = ue.shape
    itemsize = jnp.dtype(ue.dtype).itemsize

    # Tile rows: multiple of 8 sublanes, as large as the VMEM budget allows
    # (3 inputs x 2 pipeline buffers x TB x D x itemsize <= budget), capped so
    # the grid has >= 2 parallel tiles whenever the batch allows (v7x megacore).
    vmem_cap_rows = max(8, (vmem_budget_bytes // (6 * emb_dim * itemsize)) // 8 * 8)
    tb = min(int(block_rows), _round_up(batch, 8), int(vmem_cap_rows))
    if batch > 8:
        tb = min(tb, _round_up(pl.cdiv(batch, 2), 8))
    tb = max(8, (tb // 8) * 8)
    num_tiles = pl.cdiv(batch, tb)           # last tile may be partial (masked)

    kernel = functools.partial(_bpr_kernel, batch=batch)

    grid_spec = pltpu.PrefetchScalarGridSpec(
        num_scalar_prefetch=0,
        grid=(num_tiles,),
        in_specs=[
            pl.BlockSpec((tb, emb_dim), lambda t: (t, 0)),
            pl.BlockSpec((tb, emb_dim), lambda t: (t, 0)),
            pl.BlockSpec((tb, emb_dim), lambda t: (t, 0)),
        ],
        out_specs=pl.BlockSpec((1, 2), lambda t: (t, 0)),
    )

    cost = pl.CostEstimate(
        flops=10 * batch * emb_dim,
        transcendentals=2 * batch,
        bytes_accessed=3 * batch * emb_dim * itemsize + num_tiles * 2 * 4,
    )

    partials = pl.pallas_call(
        kernel,
        out_shape=jax.ShapeDtypeStruct((num_tiles, 2), jnp.float32),
        grid_spec=grid_spec,
        compiler_params=pltpu.CompilerParams(
            dimension_semantics=("parallel",),
            vmem_limit_bytes=32 * 1024 * 1024),
        cost_estimate=cost,
    )(ue, pe, ne)

    loss = -(jnp.sum(partials[:, 0]) / batch)
    if reg > 0.0:                            # static hyperparameter (trace-time)
        loss = loss + reg * (0.5 * jnp.sum(partials[:, 1]) / batch)
    return loss


def bpr_reference(u_g, i_g, u, i, j, reg):
    """Pure-JAX reference mirroring the PyTorch forward."""
    ue, pe, ne = u_g[u], i_g[i], i_g[j]
    y_ui = jnp.sum(ue * pe, axis=1)
    y_uj = jnp.sum(ue * ne, axis=1)
    log_prob = jnp.mean(jnp.log(jax.nn.sigmoid(y_ui - y_uj)))
    loss = -log_prob
    if reg > 0.0:
        l2 = (jnp.sum(ue ** 2) / 2.0 + jnp.sum(pe ** 2) / 2.0
              + jnp.sum(ne ** 2) / 2.0) / ue.shape[0]
        loss = loss + reg * l2
    return loss


def xavier_uniform(key, shape, dtype=jnp.float32):
    # torch.nn.init.xavier_uniform_ on a 2-D (fan_out, fan_in) tensor
    fan_out, fan_in = shape
    a = (6.0 / (fan_in + fan_out)) ** 0.5
    return jax.random.uniform(key, shape, dtype, minval=-a, maxval=a)


if __name__ == "__main__":
    n_users, n_items, emb_dim, reg = 16, 32, 32, 1e-3

    key = jax.random.PRNGKey(0)
    k_u, k_i, k_bu, k_bi, k_bj = jax.random.split(key, 5)

    u_g = xavier_uniform(k_u, (n_users, emb_dim))
    i_g = xavier_uniform(k_i, (n_items, emb_dim))

    # Case 1: small batch, single tile.
    batch = 8
    u = jax.random.randint(k_bu, (batch,), 0, n_users, dtype=jnp.int32)
    i = jax.random.randint(k_bi, (batch,), 0, n_items, dtype=jnp.int32)
    j = jax.random.randint(k_bj, (batch,), 0, n_items, dtype=jnp.int32)

    loss = jax.block_until_ready(bpr_forward(u_g, i_g, u, i, j, reg))
    ref = jax.block_until_ready(bpr_reference(u_g, i_g, u, i, j, reg))
    assert jnp.allclose(loss, ref, atol=2e-5, rtol=1e-5), (loss, ref)

    # Case 2: auto tile sizing, 2 tiles, partial (masked) last tile — no pad.
    batch2 = 20
    k2u, k2i, k2j = jax.random.split(jax.random.PRNGKey(1), 3)
    u2 = jax.random.randint(k2u, (batch2,), 0, n_users, dtype=jnp.int32)
    i2 = jax.random.randint(k2i, (batch2,), 0, n_items, dtype=jnp.int32)
    j2 = jax.random.randint(k2j, (batch2,), 0, n_items, dtype=jnp.int32)

    loss2 = jax.block_until_ready(bpr_forward(u_g, i_g, u2, i2, j2, reg))
    ref2 = jax.block_until_ready(bpr_reference(u_g, i_g, u2, i2, j2, reg))
    assert jnp.allclose(loss2, ref2, atol=2e-5, rtol=1e-5), (loss2, ref2)

    # Case 3: forced small tile (3 grid steps, masked tail), reg = 0 branch.
    loss3 = jax.block_until_ready(
        bpr_forward(u_g, i_g, u2, i2, j2, 0.0, block_rows=8))
    ref3 = jax.block_until_ready(bpr_reference(u_g, i_g, u2, i2, j2, 0.0))
    assert jnp.allclose(loss3, ref3, atol=2e-5, rtol=1e-5), (loss3, ref3)

    print("KERNEL_OK")
</pallas_src>

<mosaic_0001>
module attributes {stable_mosaic.version = 11 : i64} {
  func.func @_bpr_kernel(%arg0: i32, %arg1: memref<8x32xf32, #tpu.memory_space<vmem>>, %arg2: memref<8x32xf32, #tpu.memory_space<vmem>>, %arg3: memref<8x32xf32, #tpu.memory_space<vmem>>, %arg4: memref<1x2xf32, #tpu.memory_space<vmem>>) attributes {dimension_semantics = [#tpu.dimension_semantics<parallel>], iteration_bounds = array<i64: 1>, scalar_prefetch = 0 : i64, scratch_operands = 0 : i64, tpu.core_type = #tpu.core_type<tc>, window_params = [{transform_indices = @transform_0, window_bounds = array<i64: 8, 32>}, {transform_indices = @transform_1, window_bounds = array<i64: 8, 32>}, {transform_indices = @transform_2, window_bounds = array<i64: 8, 32>}, {transform_indices = @transform_3, window_bounds = array<i64: 1, 2>}]} {
    %c0 = arith.constant 0 : index
    %c0_0 = arith.constant 0 : index
    %0 = vector.load %arg1[%c0, %c0_0] : memref<8x32xf32, #tpu.memory_space<vmem>>, vector<8x32xf32>
    %c0_1 = arith.constant 0 : index
    %c0_2 = arith.constant 0 : index
    %1 = vector.load %arg2[%c0_1, %c0_2] : memref<8x32xf32, #tpu.memory_space<vmem>>, vector<8x32xf32>
    %c0_3 = arith.constant 0 : index
    %c0_4 = arith.constant 0 : index
    %2 = vector.load %arg3[%c0_3, %c0_4] : memref<8x32xf32, #tpu.memory_space<vmem>>, vector<8x32xf32>
    %3 = tpu.iota {dimensions = array<i32: 0>} : vector<8x1xi32>
    %c8_i32 = arith.constant 8 : i32
    %4 = arith.muli %arg0, %c8_i32 : i32
    %5 = vector.broadcast %4 : i32 to vector<8x1xi32>
    %6 = arith.addi %3, %5 : vector<8x1xi32>
    %c8_i32_5 = arith.constant 8 : i32
    %7 = vector.broadcast %c8_i32_5 : i32 to vector<8x1xi32>
    %8 = arith.cmpi slt, %6, %7 : vector<8x1xi32>
    %9 = arith.subf %1, %2 : vector<8x32xf32>
    %10 = arith.mulf %0, %9 : vector<8x32xf32>
    %cst = arith.constant dense<0.000000e+00> : vector<8xf32>
    %11 = vector.multi_reduction <add>, %10, %cst [1] : vector<8x32xf32> to vector<8xf32>
    %12 = vector.shape_cast %11 : vector<8xf32> to vector<8x1xf32>
    %cst_6 = arith.constant 0.000000e+00 : f32
    %13 = vector.broadcast %cst_6 : f32 to vector<8x1xf32>
    %14 = arith.cmpf ogt, %12, %13 : vector<8x1xf32>
    %cst_7 = arith.constant 0.000000e+00 : f32
    %15 = vector.broadcast %cst_7 : f32 to vector<8x1xf32>
    %16 = arith.subf %15, %12 : vector<8x1xf32>
    %17 = math.exp %16 : vector<8x1xf32>
    %18 = math.log1p %17 : vector<8x1xf32>
    %cst_8 = arith.constant 0.000000e+00 : f32
    %19 = vector.broadcast %cst_8 : f32 to vector<8x1xf32>
    %20 = arith.subf %19, %18 : vector<8x1xf32>
    %21 = math.exp %12 : vector<8x1xf32>
    %22 = math.log1p %21 : vector<8x1xf32>
    %23 = arith.subf %12, %22 : vector<8x1xf32>
    %24 = arith.select %14, %20, %23 : vector<8x1xi1>, vector<8x1xf32>
    %cst_9 = arith.constant 0.000000e+00 : f32
    %25 = vector.broadcast %cst_9 : f32 to vector<8x1xf32>
    %26 = arith.select %8, %24, %25 : vector<8x1xi1>, vector<8x1xf32>
    %27 = arith.mulf %0, %0 : vector<8x32xf32>
    %28 = arith.mulf %1, %1 : vector<8x32xf32>
    %29 = arith.addf %27, %28 : vector<8x32xf32>
    %30 = arith.mulf %2, %2 : vector<8x32xf32>
    %31 = arith.addf %29, %30 : vector<8x32xf32>
    %cst_10 = arith.constant dense<0.000000e+00> : vector<8xf32>
    %32 = vector.multi_reduction <add>, %31, %cst_10 [1] : vector<8x32xf32> to vector<8xf32>
    %33 = vector.shape_cast %32 : vector<8xf32> to vector<8x1xf32>
    %cst_11 = arith.constant 0.000000e+00 : f32
    %34 = vector.broadcast %cst_11 : f32 to vector<8x1xf32>
    %35 = arith.select %8, %33, %34 : vector<8x1xi1>, vector<8x1xf32>
    %cst_12 = arith.constant dense<0.000000e+00> : vector<1xf32>
    %36 = vector.multi_reduction <add>, %26, %cst_12 [0] : vector<8x1xf32> to vector<1xf32>
    %37 = vector.shape_cast %36 : vector<1xf32> to vector<1x1xf32>
    %cst_13 = arith.constant dense<0.000000e+00> : vector<1xf32>
    %38 = vector.multi_reduction <add>, %35, %cst_13 [0] : vector<8x1xf32> to vector<1xf32>
    %39 = vector.shape_cast %38 : vector<1xf32> to vector<1x1xf32>
    %40 = tpu.concatenate %37, %39 in 1 : vector<1x1xf32>, vector<1x1xf32> -> vector<1x2xf32>
    %c0_14 = arith.constant 0 : index
    %c0_15 = arith.constant 0 : index
    %41 = vector.load %arg4[%c0_14, %c0_15] : memref<1x2xf32, #tpu.memory_space<vmem>>, vector<1x2xf32>
    tpu.vector_store %arg4[%c0_14, %c0_15], %40 {strides = array<i32>} : memref<1x2xf32, #tpu.memory_space<vmem>>, vector<1x2xf32>,
    return
  }
  func.func @transform_0(%arg0: i32) -> (i32, i32) {
    %c0_i32 = arith.constant 0 : i32
    %c0_i32_0 = arith.constant 0 : i32
    return %arg0, %c0_i32 : i32, i32
  }
  func.func @transform_1(%arg0: i32) -> (i32, i32) {
    %c0_i32 = arith.constant 0 : i32
    %c0_i32_0 = arith.constant 0 : i32
    return %arg0, %c0_i32 : i32, i32
  }
  func.func @transform_2(%arg0: i32) -> (i32, i32) {
    %c0_i32 = arith.constant 0 : i32
    %c0_i32_0 = arith.constant 0 : i32
    return %arg0, %c0_i32 : i32, i32
  }
  func.func @transform_3(%arg0: i32) -> (i32, i32) {
    %c0_i32 = arith.constant 0 : i32
    %c0_i32_0 = arith.constant 0 : i32
    return %arg0, %c0_i32 : i32, i32
  }
}

</mosaic_0001>

<bundles_post_ra>
// kernel: tpu_custom_call.1
= control target key start
LH: loop header
LB: loop body
LE: loop exit
PB: predicated region body
PF: predicated region fallthrough
CT: control target
= control target key end

     0   :  { %8 = vsyncpa [#allocation3], 0  ;;  %s312_s0 = inlined_call_operand.hbm [shape: f32[8,32], index: 0, kind: input, shape index: {}]   ;;  %s313_s1 = inlined_call_operand.hbm [shape: f32[8,32], index: 1, kind: input, shape index: {}]   ;;  %s314_s2 = inlined_call_operand.hbm [shape: f32[8,32], index: 2, kind: input, shape index: {}]   ;;  %s315_s3 = inlined_call_operand.hbm [shape: f32[1,2], index: 3, kind: output, shape index: {}]  }
   0x1   :  { %9 = vsyncpa [#allocation6], 0 }
   0x2   :  { %10 = vsyncpa [#allocation4], 0  ;;  %s240_s12 = smov [#allocation5]   ;;  %s241_s14 = smov [#allocation2]  }
   0x3   :  { %s27_s13 = sshll.u32 %s240_s12, 4  ;;  %s17_s15 = sshll.u32 %s241_s14, 4  ;;  %s28_s13 = int_to_ptr.vmem [resolvable:$true] %s27_s13  ;;  %s18_s15 = int_to_ptr.vmem [resolvable:$true] %s17_s15 }
   0x4   :  { %s146_s18 = scalar_lea.hbm %s313_s1, 128 }
   0x5   :  { %p147_p0 = scmp.ne.s32.totalorder %s313_s1, %s146_s18  ;;  %p150_p1 = scmp.lt.u32.totalorder %s146_s18, %s313_s1 }
   0x7   :  { %p152_p2 = pnand %p150_p1, %p147_p0 }
   0x9   :  { %155 = shalt.err (!%p152_p2)
}
   0xa   :  { %s156_s23 = scalar_lea.vmem %s28_s13, 128  ;;  %p161_p4 = scmp.lt.s32.totalorder %s28_s13, %s28_s13 }
   0xb   :  { %p157_p3 = scmp.ne.s32.totalorder %s28_s13, %s156_s23  ;;  %p162_p5 = scmp.lt.s32.totalorder %s156_s23, %s156_s23 }
   0xd   :  { %p163_p6 = por %p162_p5, %p161_p4 }
   0xf   :  { %p164_p7 = pnand %p163_p6, %p157_p3 }
  0x11   :  { %167 = shalt.err (!%p164_p7)
}
  0x12   :  { %30 = dma.hbm_to_vmem [thread:$0]  %s313_s1, 128, %s28_s13, [#allocation6]  }
  0x13   :  { %s168_s28 = scalar_lea.hbm %s312_s0, 128 }
  0x14   :  { %p169_p8 = scmp.ne.s32.totalorder %s312_s0, %s168_s28  ;;  %p172_p9 = scmp.lt.u32.totalorder %s168_s28, %s312_s0 }
  0x16   :  { %p174_p10 = pnand %p172_p9, %p169_p8 }
  0x18   :  { %177 = shalt.err (!%p174_p10)
}
  0x19   :  { %s178_s6 = scalar_lea.vmem %s18_s15, 128  ;;  %p183_p12 = scmp.lt.s32.totalorder %s18_s15, %s18_s15 }
  0x1a   :  { %p179_p11 = scmp.ne.s32.totalorder %s18_s15, %s178_s6  ;;  %p184_p13 = scmp.lt.s32.totalorder %s178_s6, %s178_s6 }
  0x1c   :  { %p185_p0 = por %p184_p13, %p183_p12 }
  0x1e   :  { %p186_p1 = pnand %p185_p0, %p179_p11 }
  0x20   :  { %189 = shalt.err (!%p186_p1)
}
  0x21   :  { %20 = dma.hbm_to_vmem [thread:$0]  %s312_s0, 128, %s18_s15, [#allocation3]  }
  0x22   :  { %s242_s8 = smov [#allocation7]   ;;  %s190_s12 = scalar_lea.hbm %s314_s2, 128 }
  0x23   :  { %s37_s9 = sshll.u32 %s242_s8, 4  ;;  %p191_p2 = scmp.ne.s32.totalorder %s314_s2, %s190_s12  ;;  %s38_s9 = int_to_ptr.vmem [resolvable:$true] %s37_s9 }
  0x24   :  { %p194_p3 = scmp.lt.u32.totalorder %s190_s12, %s314_s2 }
  0x26   :  { %p196_p4 = pnand %p194_p3, %p191_p2 }
  0x28   :  { %199 = shalt.err (!%p196_p4)
}
  0x29   :  { %s200_s18 = scalar_lea.vmem %s38_s9, 128  ;;  %p205_p6 = scmp.lt.s32.totalorder %s38_s9, %s38_s9 }
  0x2a   :  { %p201_p5 = scmp.ne.s32.totalorder %s38_s9, %s200_s18  ;;  %p206_p7 = scmp.lt.s32.totalorder %s200_s18, %s200_s18 }
  0x2c   :  { %p207_p8 = por %p206_p7, %p205_p6 }
  0x2e   :  { %p208_p9 = pnand %p207_p8, %p201_p5 }
  0x30   :  { %211 = shalt.err (!%p208_p9)
}
  0x31   :  { %40 = dma.hbm_to_vmem [thread:$0]  %s314_s2, 128, %s38_s9, [#allocation6]  }
  0x32   :  { %234 = dma.done.wait [#allocation3], 128  }
  0x33   :  { %235 = vsyncadd [#allocation3], 4294967168 }
  0x34   :  { %236 = dma.done.wait [#allocation6], 256  }
  0x35   :  { %237 = vsyncadd [#allocation6], 4294967040  ;;  %v50_v0 = vld [vmem:[#allocation2] sm:$0xff]  ;;  %v51_v1 = vld [vmem:[#allocation5] sm:$0xff]  ;;  %vm61_vm0 = vcmask 261120   ;;  %s243_s2 = smov [#allocation8]  }
  0x36   :  { %v52_v2 = vld [vmem:[#allocation7] sm:$0xff]  ;;  %v93_v4 = vmul.f32 %v50_v0, %v50_v0  ;;  %v94_v5 = vmul.f32 %v51_v1, %v51_v1  ;;  %s124_s19 = sshll.u32 %s243_s2, 4  ;;  %vm114_vm4 = vcmask 7168   ;;  %vm116_vm5 = vcmask 8192   ;;  %s125_s19 = int_to_ptr.vmem [resolvable:$true] %s124_s19 }
  0x37   :  { %v59_v3 = vsub.f32 %v51_v1, %v52_v2  ;;  %v96_v6 = vmul.f32 %v52_v2, %v52_v2  ;;  %s212_s20 = scalar_lea.vmem %s125_s19, 16  ;;  %s216_s21 = scalar_lea.vmem %s125_s19, 32 }
  0x38   :  { %v95_v8 = vadd.f32 %v94_v5, %v93_v4  ;;  %p213_p10 = scmp.ne.s32.totalorder %s125_s19, %s212_s20  ;;  %p217_p11 = scmp.lt.s32.totalorder %s125_s19, %s125_s19 }
  0x39   :  { %v60_v7 = vmul.f32 %v59_v3, %v50_v0  ;;  %p218_p12 = scmp.lt.s32.totalorder %s216_s21, %s212_s20 }
  0x3a   :  { %v97_v10 = vadd.f32 %v96_v6, %v95_v8 }
  0x3b   :  { %v62_v9 = vsel %vm61_vm0, %v60_v7, 0.0  ;;  %p219_p13 = por %p218_p12, %p217_p11 }
  0x3c   :  { %63 = vadd.xlane.f32.xlu0 %v62_v9  ;;  %v98_v11 = vsel %vm61_vm0, %v97_v10, 0.0 }
  0x3d   :  { %p220_p0 = pnand %p219_p13, %p213_p10 }
  0x40   :  { %99 = vadd.xlane.f32.xlu0 %v98_v11 }
  0xc9   :  { %v64_v12 = vpop.xlane.xlu0 %63 }
  0xca   :  { %v66_v13 = vsub.f32 0.0, %v64_v12  ;;  %v79_v14 = vmul.f32 1.442695, %v64_v12  ;;  %vm65_vm3 = vcmp.gt.f32.partialorder %v64_v12, 0.0 }
  0xcc   :  { %v67_v15 = vmul.f32 1.442695, %v66_v13  ;;  %138 = vpow2.f32 %v79_v14 }
  0xcd   :  { %v100_v22 = vpop.xlane.xlu0 %99 }
  0xce   :  { %140 = vpow2.f32 %v67_v15  ;;  %v108_v26 = vrot.slane %v100_v22, 4 }
  0xd0   :  { %v109_v35 = vadd.f32 %v108_v26, %v100_v22 }
  0xd2   :  { %v110_v39 = vrot.slane %v109_v35, 2 }
  0xd4   :  { %v111_v43 = vadd.f32 %v110_v39, %v109_v35 }
  0xd6   :  { %v139_v16 = vpop.eup %138  ;;  %v112_v45 = vrot.slane %v111_v43, 1 }
  0xd7   :  { %v81_v17 = vadd.f32 1.0, %v139_v16  ;;  %v84_v20 = vmul.f32 -0.5, %v139_v16  ;;  %v87_v24 = vand.u32 2147483647, %v139_v16 }
  0xd8   :  { %v141_v18 = vpop.eup %140  ;;  %v113_v48 = vadd.f32 %v112_v45, %v111_v43 }
  0xd9   :  { %v69_v19 = vadd.f32 1.0, %v141_v18  ;;  %142 = vlog2.f32 %v81_v17  ;;  %v72_v21 = vmul.f32 -0.5, %v141_v18  ;;  %v85_v23 = vadd.f32 1.0, %v84_v20 }
  0xda   :  { %v75_v28 = vand.u32 2147483647, %v141_v18  ;;  %vm88_vm1 = vcmp.lt.f32.partialorder %v87_v24, 0.0004427343 }
  0xdb   :  { %144 = vlog2.f32 %v69_v19  ;;  %v73_v25 = vadd.f32 1.0, %v72_v21  ;;  %v86_v30 = vmul.f32 %v139_v16, %v85_v23 }
  0xdc   :  { %vm76_vm2 = vcmp.lt.f32.partialorder %v75_v28, 0.0004427343 }
  0xdd   :  { %v74_v33 = vmul.f32 %v141_v18, %v73_v25 }
  0xe3   :  { %v143_v27 = vpop.eup %142 }
  0xe4   :  { %v83_v29 = vmul.f32 0.6931472, %v143_v27 }
  0xe5   :  { %v145_v31 = vpop.eup %144 }
  0xe6   :  { %v71_v32 = vmul.f32 0.6931472, %v145_v31  ;;  %v89_v34 = vsel %vm88_vm1, %v86_v30, %v83_v29 }
  0xe7   :  { %v90_v38 = vsub.f32 %v64_v12, %v89_v34 }
  0xe8   :  { %v77_v36 = vsel %vm76_vm2, %v74_v33, %v71_v32 }
  0xe9   :  { %v78_v37 = vsub.f32 0.0, %v77_v36 }
  0xeb   :  { %v91_v40 = vsel %vm65_vm3, %v78_v37, %v90_v38 }
  0xec   :  { %v102_v41 = vrot.slane %v91_v40, 4 }
  0xee   :  { %v103_v42 = vadd.f32 %v102_v41, %v91_v40 }
  0xf0   :  { %v104_v44 = vrot.slane %v103_v42, 2 }
  0xf2   :  { %v105_v46 = vadd.f32 %v104_v44, %v103_v42 }
  0xf4   :  { %v106_v47 = vrot.slane %v105_v46, 1 }
  0xf6   :  { %v107_v49 = vadd.f32 %v106_v47, %v105_v46 }
  0xf8   :  { %v115_v50 = vsel %vm114_vm4, %v107_v49, %v113_v48 }
  0xf9   :  { %117 = vst.msk [vmem:[#allocation8] sm:$0x1] %vm116_vm5, %v115_v50 }
  0xfa   :  { %223 = shalt.err (!%p220_p0)
}
  0xfb   :  { %s224_s24 = scalar_lea.hbm %s315_s3, 16 }
  0xfc   :  { %p225_p1 = scmp.ne.s32.totalorder %s315_s3, %s224_s24  ;;  %p228_p2 = scmp.lt.u32.totalorder %s224_s24, %s315_s3 }
  0xfe   :  { %p230_p3 = pnand %p228_p2, %p225_p1 }
 0x100   :  { %233 = shalt.err (!%p230_p3)
}
 0x101   :  { %127 = dma.vmem_to_hbm [thread:$0]  %s125_s19, 16, %s315_s3, [#allocation4]  }
 0x102   :  { %238 = dma.done.wait [#allocation4], 16  }
 0x103   :  { %239 = vsyncadd [#allocation4], 4294967280 }
 0x104   :  { %131 = vsyncpa [#allocation3], 1 }
 0x105   :  { %132 = vsyncpa [#allocation6], 1 }
 0x106   :  { %133 = vsyncpa [#allocation4], 1 }

</bundles_post_ra>
